<compile_context>
chip_gen: v7x
topology: tpu7x:2x2x1
jax: 0.10.0
libtpu: 0.0.40
codegen_flags: <defaults>
</compile_context>

<pallas_src>
import jax
import jax.numpy as jnp
from jax import lax
from jax.experimental import pallas as pl
from jax.experimental.pallas import tpu as pltpu


def bertgcn_kernel(text_ref, dep_ref, aff_ref,
                   w3_ref, b3_ref, w4_ref, b4_ref, pooled_ref):
    f32 = jnp.float32
    tb, s, d = text_ref.shape
    cdt = text_ref.dtype                         # MXU compute dtype (bf16 or f32)
    # Exact reciprocal on the f32 verification path, EUP-approx on bf16.
    approx = jnp.dtype(cdt) == jnp.dtype(jnp.bfloat16)

    text = text_ref[...]                         # (TB, S, D)
    dep = dep_ref[...]                           # (TB, S, S)
    aff = aff_ref[...]                           # (TB, S, S)

    # Hoisted row-sum denominators (adjacency is 0/1 -> exact integer sums).
    inv_dep = pl.reciprocal(
        jnp.sum(dep.astype(f32), axis=2, keepdims=True) + 1.0, approx=approx)
    inv_aff = pl.reciprocal(
        jnp.sum(aff.astype(f32), axis=2, keepdims=True) + 1.0, approx=approx)

    def gcn(x_cdt, adj_cdt, inv_denom, w_ref, b_ref):
        # Fused across the batch tile: one (TB*S, D) @ (D, D) MXU op.
        # The reshape is a free view when S % 8 == 0 (true here / real BERT).
        hidden = jnp.dot(x_cdt.reshape(tb * s, d), w_ref[...],
                         preferred_element_type=f32)
        hidden = hidden.reshape(tb, s, d).astype(cdt)
        # Batched adj @ hidden, contracting without any explicit transpose.
        agg = lax.dot_general(adj_cdt, hidden,
                              dimension_numbers=(((2,), (1,)), ((0,), (0,))),
                              preferred_element_type=f32)        # (TB, S, D)
        return agg * inv_denom + b_ref[...]                      # bias add in f32

    # NOTE: gc1/gc2 of the PyTorch forward are dead code (x is overwritten by
    # gc3(text_out, dep) before use), so they are intentionally omitted.
    # Cast back to the compute dtype right after ReLU so only one compute-dtype
    # copy of the activations stays live between layers.
    x1 = jnp.maximum(gcn(text, dep, inv_dep, w3_ref, b3_ref), 0.0).astype(cdt)
    x2 = jnp.maximum(gcn(x1, aff, inv_aff, w4_ref, b4_ref), 0.0)   # f32 (only its S-sum survives)

    # Attention pooling, folded:
    #   scores[b, t] = sum_s x[b,s,:].text[b,t,:] = (sum_s x[b,s,:]).text[b,t,:]
    xs = jnp.sum(x2, axis=1, keepdims=True).astype(cdt)            # (TB, 1, D)
    scores = lax.dot_general(xs, text,
                             dimension_numbers=(((2,), (2,)), ((0,), (0,))),
                             preferred_element_type=f32)           # (TB, 1, S)
    scores = scores - jnp.max(scores, axis=2, keepdims=True)
    e = jnp.exp(scores)
    inv_l = pl.reciprocal(jnp.sum(e, axis=2, keepdims=True), approx=approx)
    pooled = lax.dot_general(e.astype(cdt), text,
                             dimension_numbers=(((2,), (1,)), ((0,), (0,))),
                             preferred_element_type=f32)           # (TB, 1, D)
    pooled_ref[...] = (pooled * inv_l).astype(pooled_ref.dtype)


def _default_vmem_budget_bytes():
    """~75% of the queried per-core VMEM (48 MiB v7x, 96 MiB v5e/v6e)."""
    cap = None
    try:
        cap = getattr(pltpu.get_tpu_info(), "vmem_capacity_bytes", None)
    except Exception:  # capability probe only; fall back to a safe constant
        cap = None
    if not cap:
        cap = 64 << 20        # conservative: v7x per-TensorCore VMEM
    return int(cap) * 3 // 4


def _choose_batch_tile(B, S, D, compute_bytes, vmem_budget_bytes):
    """Largest batch tile whose working set fits the VMEM budget.

    Per grid step (per batch row):
      inputs, double-buffered : 2 * (S*D + 2*S*S) * compute_bytes
      live f32 temporaries    : ~3 * S*D * 4   (hidden / agg / x)
    plus the grid-invariant weights/biases (double-buffered blocks).
    """
    per_row = 2 * (S * D + 2 * S * S) * compute_bytes + 3 * S * D * 4
    fixed = 2 * 2 * (D * D * compute_bytes + D * 4)
    budget_rows = max(1, (vmem_budget_bytes - fixed) // per_row)

    divisors = [t for t in range(1, B + 1) if B % t == 0]
    fitting = [t for t in divisors if t <= budget_rows] or [1]
    tb = max(fitting)

    # Prefer an even-length grid (>= 2 steps) so both v7x TensorCores get work
    # under dimension_semantics=("parallel",), as long as it costs at most one
    # halving of the tile (per-step overhead ~0.35 us is negligible vs. 2x TC).
    even = [t for t in fitting if (B // t) % 2 == 0]
    if even and 2 * max(even) >= tb:
        tb = max(even)
    return tb


def _build_pallas_call(B, S, D, TB, vmem_limit_bytes):
    seq_spec = pl.BlockSpec((TB, S, D), lambda b: (b, 0, 0))
    adj_spec = pl.BlockSpec((TB, S, S), lambda b: (b, 0, 0))
    # Grid-invariant weights/biases: constant index_map -> block is revisited,
    # not re-DMA'd per step.
    w_spec = pl.BlockSpec((D, D), lambda b: (0, 0))
    bias_spec = pl.BlockSpec((1, D), lambda b: (0, 0))
    # (1, D) trailing block dims equal the full array dims, so the BlockSpec is
    # legal for any TB (including TB < 8); store width is D (lane-dense for
    # real BERT D >= 128).
    out_spec = pl.BlockSpec((TB, 1, D), lambda b: (b, 0, 0))

    return pl.pallas_call(
        bertgcn_kernel,
        out_shape=jax.ShapeDtypeStruct((B, 1, D), jnp.float32),
        grid_spec=pltpu.PrefetchScalarGridSpec(
            num_scalar_prefetch=0,
            grid=(B // TB,),
            in_specs=[seq_spec, adj_spec, adj_spec,
                      w_spec, bias_spec, w_spec, bias_spec],
            out_specs=out_spec),
        compiler_params=pltpu.CompilerParams(
            dimension_semantics=("parallel",),
            vmem_limit_bytes=int(vmem_limit_bytes)),
    )


def bertgcn_forward(text_out, dep_graph, aff_graph, params, *,
                    compute_dtype=jnp.bfloat16, vmem_budget_bytes=None):
    B, S, D = text_out.shape
    cdt = compute_dtype
    cbytes = jnp.dtype(cdt).itemsize
    if vmem_budget_bytes is None:
        vmem_budget_bytes = _default_vmem_budget_bytes()
    TB = _choose_batch_tile(B, S, D, cbytes, vmem_budget_bytes)

    call = _build_pallas_call(B, S, D, TB, vmem_budget_bytes)
    pooled = call(text_out.astype(cdt),
                  dep_graph.astype(cdt), aff_graph.astype(cdt),
                  params["w3"].astype(cdt), params["b3"],
                  params["w4"].astype(cdt), params["b4"])
    pooled = pooled[:, 0, :]                                     # (B, D), f32
    # Tiny (D, P=3) classifier stays in the wrapper so the kernel never does a
    # 3-lane masked store.
    return pooled @ params["fc_w"] + params["fc_b"]              # (B, P)


def bertgcn_reference(text_out, dep_graph, aff_graph, params):
    """Pure-JAX reference reproducing the PyTorch forward (incl. dead gc1/gc2)."""
    def gcn(x, adj, w, b):
        hidden = jnp.einsum("bsd,de->bse", x, w)
        denom = jnp.sum(adj, axis=2, keepdims=True) + 1.0
        return jnp.einsum("bst,btd->bsd", adj, hidden) / denom + b

    relu = lambda v: jnp.maximum(v, 0.0)
    x = relu(gcn(text_out, dep_graph, params["w1"], params["b1"][0]))
    x = relu(gcn(x, aff_graph, params["w2"], params["b2"][0]))
    x = relu(gcn(text_out, dep_graph, params["w3"], params["b3"][0]))
    x = relu(gcn(x, aff_graph, params["w4"], params["b4"][0]))
    alpha_mat = jnp.einsum("bsd,btd->bst", x, text_out)
    alpha = jax.nn.softmax(jnp.sum(alpha_mat, axis=1, keepdims=True), axis=2)
    pooled = jnp.einsum("bus,bsd->bud", alpha, text_out)[:, 0, :]
    return pooled @ params["fc_w"] + params["fc_b"][0]


if __name__ == "__main__":
    # Small synthetic config: batch=8, seq=8, bert_dim=32, polarities=3.
    B, S, D, P = 8, 8, 32, 3
    vocab = 30

    key = jax.random.PRNGKey(0)
    keys = jax.random.split(key, 16)

    params = {
        "w1": jax.random.uniform(keys[0], (D, D), jnp.float32, -0.1, 0.1),
        "b1": jax.random.uniform(keys[1], (1, D), jnp.float32, -0.1, 0.1),
        "w2": jax.random.uniform(keys[2], (D, D), jnp.float32, -0.1, 0.1),
        "b2": jax.random.uniform(keys[3], (1, D), jnp.float32, -0.1, 0.1),
        "w3": jax.random.uniform(keys[4], (D, D), jnp.float32, -0.1, 0.1),
        "b3": jax.random.uniform(keys[5], (1, D), jnp.float32, -0.1, 0.1),
        "w4": jax.random.uniform(keys[6], (D, D), jnp.float32, -0.1, 0.1),
        "b4": jax.random.uniform(keys[7], (1, D), jnp.float32, -0.1, 0.1),
        "fc_w": jax.random.uniform(keys[8], (D, P), jnp.float32, -0.1, 0.1),
        "fc_b": jax.random.uniform(keys[9], (1, P), jnp.float32, -0.1, 0.1),
    }

    # Inputs of the original module.
    text_bert_indices = jax.random.randint(keys[10], (B, S), 0, vocab)
    bert_segments_ids = jax.random.randint(keys[11], (B, S), 0, 2)
    dep_graph = (jax.random.uniform(keys[12], (B, S, S)) > 0.5).astype(jnp.float32)
    aff_graph = (jax.random.uniform(keys[13], (B, S, S)) > 0.5).astype(jnp.float32)
    eye = jnp.broadcast_to(jnp.eye(S, dtype=jnp.float32), (B, S, S))
    dep_graph = jnp.maximum(dep_graph, eye)
    aff_graph = jnp.maximum(aff_graph, eye)

    # Stand-in BERT: token embedding + segment embedding lookup (plain-JAX glue).
    token_emb = 0.05 * jax.random.normal(keys[14], (vocab, D), jnp.float32)
    seg_emb = 0.05 * jax.random.normal(keys[15], (2, D), jnp.float32)
    text_out = token_emb[text_bert_indices] + seg_emb[bert_segments_ids]  # (B, S, D)

    ref = bertgcn_reference(text_out, dep_graph, aff_graph, params)

    # f32 MXU operands + exact reciprocals: tight numeric check.
    out_f32 = bertgcn_forward(text_out, dep_graph, aff_graph, params,
                              compute_dtype=jnp.float32)
    out_f32 = jax.block_until_ready(out_f32)
    assert out_f32.shape == (B, P), out_f32.shape
    assert jnp.allclose(out_f32, ref, atol=5e-4, rtol=5e-3), (out_f32, ref)

    # bf16 MXU operands (default fast path on all generations): looser tolerance.
    out_bf16 = bertgcn_forward(text_out, dep_graph, aff_graph, params)
    out_bf16 = jax.block_until_ready(out_bf16)
    assert out_bf16.shape == (B, P), out_bf16.shape
    assert jnp.allclose(out_bf16, ref, atol=1e-2, rtol=5e-2), (out_bf16, ref)

    print("KERNEL_OK")
</pallas_src>

<mosaic_0001>
module attributes {stable_mosaic.version = 11 : i64} {
  func.func @bertgcn_kernel(%arg0: i32, %arg1: memref<4x8x32xf32, #tpu.memory_space<vmem>>, %arg2: memref<4x8x8xf32, #tpu.memory_space<vmem>>, %arg3: memref<4x8x8xf32, #tpu.memory_space<vmem>>, %arg4: memref<32x32xf32, #tpu.memory_space<vmem>>, %arg5: memref<1x32xf32, #tpu.memory_space<vmem>>, %arg6: memref<32x32xf32, #tpu.memory_space<vmem>>, %arg7: memref<1x32xf32, #tpu.memory_space<vmem>>, %arg8: memref<4x1x32xf32, #tpu.memory_space<vmem>>) attributes {dimension_semantics = [#tpu.dimension_semantics<parallel>], iteration_bounds = array<i64: 2>, scalar_prefetch = 0 : i64, scratch_operands = 0 : i64, tpu.core_type = #tpu.core_type<tc>, window_params = [{transform_indices = @transform_0, window_bounds = array<i64: 4, 8, 32>}, {transform_indices = @transform_1, window_bounds = array<i64: 4, 8, 8>}, {transform_indices = @transform_2, window_bounds = array<i64: 4, 8, 8>}, {pipeline_mode = #tpu.pipeline_mode<synchronous>, transform_indices = @transform_3, window_bounds = array<i64: 32, 32>}, {pipeline_mode = #tpu.pipeline_mode<synchronous>, transform_indices = @transform_4, window_bounds = array<i64: 1, 32>}, {pipeline_mode = #tpu.pipeline_mode<synchronous>, transform_indices = @transform_5, window_bounds = array<i64: 32, 32>}, {pipeline_mode = #tpu.pipeline_mode<synchronous>, transform_indices = @transform_6, window_bounds = array<i64: 1, 32>}, {transform_indices = @transform_7, window_bounds = array<i64: 4, 1, 32>}]} {
    %c0 = arith.constant 0 : index
    %c0_0 = arith.constant 0 : index
    %c0_1 = arith.constant 0 : index
    %0 = vector.load %arg1[%c0, %c0_0, %c0_1] : memref<4x8x32xf32, #tpu.memory_space<vmem>>, vector<4x8x32xf32>
    %c0_2 = arith.constant 0 : index
    %c0_3 = arith.constant 0 : index
    %c0_4 = arith.constant 0 : index
    %1 = vector.load %arg2[%c0_2, %c0_3, %c0_4] : memref<4x8x8xf32, #tpu.memory_space<vmem>>, vector<4x8x8xf32>
    %c0_5 = arith.constant 0 : index
    %c0_6 = arith.constant 0 : index
    %c0_7 = arith.constant 0 : index
    %2 = vector.load %arg3[%c0_5, %c0_6, %c0_7] : memref<4x8x8xf32, #tpu.memory_space<vmem>>, vector<4x8x8xf32>
    %cst = arith.constant dense<0.000000e+00> : vector<4x8xf32>
    %3 = vector.multi_reduction <add>, %1, %cst [2] : vector<4x8x8xf32> to vector<4x8xf32>
    %4 = vector.shape_cast %3 : vector<4x8xf32> to vector<4x8x1xf32>
    %cst_8 = arith.constant 1.000000e+00 : f32
    %5 = vector.broadcast %cst_8 : f32 to vector<4x8x1xf32>
    %6 = arith.addf %4, %5 : vector<4x8x1xf32>
    %7 = tpu.reciprocal %6 : vector<4x8x1xf32> -> vector<4x8x1xf32>
    %cst_9 = arith.constant dense<0.000000e+00> : vector<4x8xf32>
    %8 = vector.multi_reduction <add>, %2, %cst_9 [2] : vector<4x8x8xf32> to vector<4x8xf32>
    %9 = vector.shape_cast %8 : vector<4x8xf32> to vector<4x8x1xf32>
    %cst_10 = arith.constant 1.000000e+00 : f32
    %10 = vector.broadcast %cst_10 : f32 to vector<4x8x1xf32>
    %11 = arith.addf %9, %10 : vector<4x8x1xf32>
    %12 = tpu.reciprocal %11 : vector<4x8x1xf32> -> vector<4x8x1xf32>
    %13 = vector.shape_cast %0 : vector<4x8x32xf32> to vector<32x32xf32>
    %c0_11 = arith.constant 0 : index
    %c0_12 = arith.constant 0 : index
    %14 = vector.load %arg4[%c0_11, %c0_12] : memref<32x32xf32, #tpu.memory_space<vmem>>, vector<32x32xf32>
    %cst_13 = arith.constant dense<0.000000e+00> : vector<32x32xf32>
    %15 = tpu.matmul %13, %14, %cst_13 {dimension_numbers = #tpu.dot_dimension_numbers<[1], [0], [0], [1], [0, 0, 1, 1], [], []>} : vector<32x32xf32>, vector<32x32xf32>, vector<32x32xf32> -> vector<32x32xf32>
    %16 = vector.shape_cast %15 : vector<32x32xf32> to vector<4x8x32xf32>
    %cst_14 = arith.constant dense<0.000000e+00> : vector<4x8x32xf32>
    %17 = tpu.matmul %1, %16, %cst_14 {dimension_numbers = #tpu.dot_dimension_numbers<[2], [1], [1], [2], [0, 0, 0, 1, 1, 2], [0], [0]>} : vector<4x8x8xf32>, vector<4x8x32xf32>, vector<4x8x32xf32> -> vector<4x8x32xf32>
    %18 = vector.broadcast %7 : vector<4x8x1xf32> to vector<4x8x32xf32>
    %19 = arith.mulf %17, %18 : vector<4x8x32xf32>
    %c0_15 = arith.constant 0 : index
    %c0_16 = arith.constant 0 : index
    %20 = vector.load %arg5[%c0_15, %c0_16] : memref<1x32xf32, #tpu.memory_space<vmem>>, vector<1x32xf32>
    %21 = vector.shape_cast %20 : vector<1x32xf32> to vector<1x1x32xf32>
    %22 = vector.broadcast %21 : vector<1x1x32xf32> to vector<4x8x32xf32>
    %23 = arith.addf %19, %22 : vector<4x8x32xf32>
    %cst_17 = arith.constant 0.000000e+00 : f32
    %24 = vector.broadcast %cst_17 : f32 to vector<4x8x32xf32>
    %25 = arith.maximumf %23, %24 : vector<4x8x32xf32>
    %26 = vector.shape_cast %25 : vector<4x8x32xf32> to vector<32x32xf32>
    %c0_18 = arith.constant 0 : index
    %c0_19 = arith.constant 0 : index
    %27 = vector.load %arg6[%c0_18, %c0_19] : memref<32x32xf32, #tpu.memory_space<vmem>>, vector<32x32xf32>
    %cst_20 = arith.constant dense<0.000000e+00> : vector<32x32xf32>
    %28 = tpu.matmul %26, %27, %cst_20 {dimension_numbers = #tpu.dot_dimension_numbers<[1], [0], [0], [1], [0, 0, 1, 1], [], []>} : vector<32x32xf32>, vector<32x32xf32>, vector<32x32xf32> -> vector<32x32xf32>
    %29 = vector.shape_cast %28 : vector<32x32xf32> to vector<4x8x32xf32>
    %cst_21 = arith.constant dense<0.000000e+00> : vector<4x8x32xf32>
    %30 = tpu.matmul %2, %29, %cst_21 {dimension_numbers = #tpu.dot_dimension_numbers<[2], [1], [1], [2], [0, 0, 0, 1, 1, 2], [0], [0]>} : vector<4x8x8xf32>, vector<4x8x32xf32>, vector<4x8x32xf32> -> vector<4x8x32xf32>
    %31 = vector.broadcast %12 : vector<4x8x1xf32> to vector<4x8x32xf32>
    %32 = arith.mulf %30, %31 : vector<4x8x32xf32>
    %c0_22 = arith.constant 0 : index
    %c0_23 = arith.constant 0 : index
    %33 = vector.load %arg7[%c0_22, %c0_23] : memref<1x32xf32, #tpu.memory_space<vmem>>, vector<1x32xf32>
    %34 = vector.shape_cast %33 : vector<1x32xf32> to vector<1x1x32xf32>
    %35 = vector.broadcast %34 : vector<1x1x32xf32> to vector<4x8x32xf32>
    %36 = arith.addf %32, %35 : vector<4x8x32xf32>
    %cst_24 = arith.constant 0.000000e+00 : f32
    %37 = vector.broadcast %cst_24 : f32 to vector<4x8x32xf32>
    %38 = arith.maximumf %36, %37 : vector<4x8x32xf32>
    %cst_25 = arith.constant dense<0.000000e+00> : vector<4x32xf32>
    %39 = vector.multi_reduction <add>, %38, %cst_25 [1] : vector<4x8x32xf32> to vector<4x32xf32>
    %40 = vector.shape_cast %39 : vector<4x32xf32> to vector<4x1x32xf32>
    %cst_26 = arith.constant dense<0.000000e+00> : vector<4x1x8xf32>
    %41 = tpu.matmul %40, %0, %cst_26 {dimension_numbers = #tpu.dot_dimension_numbers<[2], [2], [1], [1], [0, 0, 0, 1, 1, 1], [0], [0]>} : vector<4x1x32xf32>, vector<4x8x32xf32>, vector<4x1x8xf32> -> vector<4x1x8xf32>
    %cst_27 = arith.constant dense<0xFF800000> : vector<4x1xf32>
    %42 = vector.multi_reduction <maximumf>, %41, %cst_27 [2] : vector<4x1x8xf32> to vector<4x1xf32>
    %43 = vector.shape_cast %42 : vector<4x1xf32> to vector<4x1x1xf32>
    %44 = vector.broadcast %43 : vector<4x1x1xf32> to vector<4x1x8xf32>
    %45 = arith.subf %41, %44 : vector<4x1x8xf32>
    %46 = math.exp %45 : vector<4x1x8xf32>
    %cst_28 = arith.constant dense<0.000000e+00> : vector<4x1xf32>
    %47 = vector.multi_reduction <add>, %46, %cst_28 [2] : vector<4x1x8xf32> to vector<4x1xf32>
    %48 = vector.shape_cast %47 : vector<4x1xf32> to vector<4x1x1xf32>
    %49 = tpu.reciprocal %48 : vector<4x1x1xf32> -> vector<4x1x1xf32>
    %cst_29 = arith.constant dense<0.000000e+00> : vector<4x1x32xf32>
    %50 = tpu.matmul %46, %0, %cst_29 {dimension_numbers = #tpu.dot_dimension_numbers<[2], [1], [1], [2], [0, 0, 0, 1, 1, 2], [0], [0]>} : vector<4x1x8xf32>, vector<4x8x32xf32>, vector<4x1x32xf32> -> vector<4x1x32xf32>
    %51 = vector.broadcast %49 : vector<4x1x1xf32> to vector<4x1x32xf32>
    %52 = arith.mulf %50, %51 : vector<4x1x32xf32>
    %c0_30 = arith.constant 0 : index
    %c0_31 = arith.constant 0 : index
    %c0_32 = arith.constant 0 : index
    %53 = vector.load %arg8[%c0_30, %c0_31, %c0_32] : memref<4x1x32xf32, #tpu.memory_space<vmem>>, vector<4x1x32xf32>
    tpu.vector_store %arg8[%c0_30, %c0_31, %c0_32], %52 {strides = array<i32>} : memref<4x1x32xf32, #tpu.memory_space<vmem>>, vector<4x1x32xf32>,
    return
  }
  func.func @transform_0(%arg0: i32) -> (i32, i32, i32) {
    %c0_i32 = arith.constant 0 : i32
    %c0_i32_0 = arith.constant 0 : i32
    %c0_i32_1 = arith.constant 0 : i32
    return %arg0, %c0_i32, %c0_i32_0 : i32, i32, i32
  }
  func.func @transform_1(%arg0: i32) -> (i32, i32, i32) {
    %c0_i32 = arith.constant 0 : i32
    %c0_i32_0 = arith.constant 0 : i32
    %c0_i32_1 = arith.constant 0 : i32
    return %arg0, %c0_i32, %c0_i32_0 : i32, i32, i32
  }
  func.func @transform_2(%arg0: i32) -> (i32, i32, i32) {
    %c0_i32 = arith.constant 0 : i32
    %c0_i32_0 = arith.constant 0 : i32
    %c0_i32_1 = arith.constant 0 : i32
    return %arg0, %c0_i32, %c0_i32_0 : i32, i32, i32
  }
  func.func @transform_3(%arg0: i32) -> (i32, i32) {
    %c0_i32 = arith.constant 0 : i32
    %c0_i32_0 = arith.constant 0 : i32
    %c0_i32_1 = arith.constant 0 : i32
    return %c0_i32, %c0_i32_0 : i32, i32
  }
  func.func @transform_4(%arg0: i32) -> (i32, i32) {
    %c0_i32 = arith.constant 0 : i32
    %c0_i32_0 = arith.constant 0 : i32
    %c0_i32_1 = arith.constant 0 : i32
    return %c0_i32, %c0_i32_0 : i32, i32
  }
  func.func @transform_5(%arg0: i32) -> (i32, i32) {
    %c0_i32 = arith.constant 0 : i32
    %c0_i32_0 = arith.constant 0 : i32
    %c0_i32_1 = arith.constant 0 : i32
    return %c0_i32, %c0_i32_0 : i32, i32
  }
  func.func @transform_6(%arg0: i32) -> (i32, i32) {
    %c0_i32 = arith.constant 0 : i32
    %c0_i32_0 = arith.constant 0 : i32
    %c0_i32_1 = arith.constant 0 : i32
    return %c0_i32, %c0_i32_0 : i32, i32
  }
  func.func @transform_7(%arg0: i32) -> (i32, i32, i32) {
    %c0_i32 = arith.constant 0 : i32
    %c0_i32_0 = arith.constant 0 : i32
    %c0_i32_1 = arith.constant 0 : i32
    return %arg0, %c0_i32, %c0_i32_0 : i32, i32, i32
  }
}

</mosaic_0001>

<bundles_post_ra>
// kernel: tpu_custom_call.1
= control target key start
LH: loop header
LB: loop body
LE: loop exit
PB: predicated region body
PF: predicated region fallthrough
CT: control target
= control target key end

     0   :  { %s3179_s0 = inlined_call_operand.hbm [shape: f32[8,8,32], index: 0, kind: input, shape index: {}]   ;;  %s3180_s1 = inlined_call_operand.hbm [shape: f32[8,8,8], index: 1, kind: input, shape index: {}]   ;;  %s3181_s2 = inlined_call_operand.hbm [shape: f32[8,8,8], index: 2, kind: input, shape index: {}]   ;;  %s3182_s3 = inlined_call_operand.hbm [shape: f32[32,32], index: 3, kind: input, shape index: {}]   ;;  %s3183_s4 = inlined_call_operand.vmem [shape: f32[1,32], index: 4, kind: input, shape index: {}]   ;;  %s3184_s5 = inlined_call_operand.hbm [shape: f32[32,32], index: 5, kind: input, shape index: {}]   ;;  %s3185_s6 = inlined_call_operand.vmem [shape: f32[1,32], index: 6, kind: input, shape index: {}]   ;;  %s3186_s7 = inlined_call_operand.hbm [shape: f32[8,1,32], index: 7, kind: output, shape index: {}]  }
   0x1   :  { %3208 = sst [smem:[#allocation21_spill]] %s3180_s1 }
   0x2   :  { %3209 = sst [smem:[#allocation22_spill]] %s3182_s3 }
   0x3   :  { %12 = vsyncpa [#allocation3], 0 }
   0x4   :  { %14 = vsyncpa [#allocation3 + $0x1], 0 }
   0x5   :  { %15 = vsyncpa [#allocation6], 0 }
   0x6   :  { %17 = vsyncpa [#allocation6 + $0x1], 0 }
   0x7   :  { %18 = vsyncpa [#allocation9], 0 }
   0x8   :  { %19 = vsyncpa [#allocation4], 0 }
   0x9   :  { %21 = vsyncpa [#allocation4 + $0x1], 0  ;;  %s2717_s24 = smov 0   ;;  %s2719_s25 = smov 0  }
   0xa   :  { %s2721_s26 = smov 0   ;;  %s2723_s27 = smov 0  }
   0xb LB: > { %3210 = sst [smem:[#allocation16_spill]] %s2651_s24  ;;  %s2738_s28 = sadd.s32 4294967295, %s2663_s27   ;;  %s2663_s27 = sphi %s2723_s27, %s3245_s27   ;;  %s2659_s26 = sphi %s2721_s26, %s3249_s26   ;;  %s2655_s25 = sphi %s2719_s25, %s3248_s25   ;;  %s2651_s24 = sphi %s2717_s24, %s3247_s24  }
   0xc   : > { %3211 = sst [smem:[#allocation17_spill]] %s2663_s27  ;;  %s2096_s29 = sadd.s32 4294967294, %s2663_s27  }
   0xd   : > { %s2742_s30 = sadd.s32 1, %s2663_s27   ;;  %s34_s8 = sadd.s32 1, %s2659_s26 }
   0xe   : > { %3212 = sst [smem:[#allocation18_spill]] %s2742_s30  ;;  %s31_s9 = ssub.s32 %s2663_s27, %s2742_s30 }
   0xf   : > { %p41_p0 = scmp.ne.s32.totalorder %s2659_s26, %s2655_s25  ;;  %p32_p1 = scmp.eq.s32.totalorder %s31_s9, 0 }
  0x10   : > { %p42_p2 = scmp.eq.s32.totalorder %s2663_s27, 0  ;;  %p47_p3 = scmp.ne.s32.totalorder %s2655_s25, %s2651_s24 }
  0x11   : > { %p3188_p4 = scmp.eq.s32.totalorder %s2738_s28, 0  ;;  %p207_p7 = scmp.eq.s32.totalorder %s2738_s28, 1 }
  0x12   : > { %s2754_s10 = scalar_select %p32_p1, %s2659_s26, %s34_s8  }
  0x13   : > { %p2756_p5 = por %p42_p2, %p41_p0  ;;  %p2762_p6 = por %p3188_p4, %p47_p3 }
  0x14   : > { %3213 = sst [smem:[#allocation19_spill]] %s2754_s10  ;;  %p213_p8 = scmp.eq.s32.totalorder %s2096_s29, 1 }
  0x15   : > { %s3214_s11 = scalar_select %p2756_p5, 1, 0 }
  0x16   : > { %s3215_s12 = scalar_select %p2762_p6, 1, 0 }
  0x17   : > { %p2097_p9 = scmp.ge.s32.totalorder %s2663_s27, 1  ;;  %p220_p10 = scmp.lt.s32.totalorder %s2663_s27, 3 }
  0x18   : > { %p2769_p11 = por %p207_p7, %p41_p0  ;;  %p2773_p12 = por %p213_p8, %p47_p3 }
  0x19   : > { %p2777_p13 = pnand %p2097_p9, %p220_p10  ;;  %s2665_s16 = smov [#allocation8]  }
  0x1a   : > { %s3216_s13 = scalar_select %p2769_p11, 1, 0 }
  0x1b   : > { %s3217_s14 = scalar_select %p2773_p12, 1, 0 }
  0x1c   : > { %s3219_s15 = scalar_select %p2777_p13, 1, 0 }
  0x1d   : > { %3218 = sst [smem:[#allocation20_spill]] %s3217_s14  ;;  %p2344_p1 = pneg %p2777_p13 }
  0x1e   : > { %s232_s17 = sshll.u32 %s2665_s16, 4  ;;  %s3187_s19 = sand.u32 1, %s2659_s26   ;;  %s233_s17 = int_to_ptr.vmem [resolvable:$true] %s232_s17 }
  0x1f   : > { %p2785_p2 = pnand %p2344_p1, %p3188_p4  ;;  %s2794_s20 = sshll.u32 %s3187_s19, 5 }
  0x20   : > { %s3221_s3 = sld [smem:[#allocation22_spill]] }
  0x21   : > { %s3220_s18 = scalar_select %p2785_p2, 1, 0 }
  0x22   : > { %p3198_p8 = pneg %p2785_p2 }
  0x26   : > { %s2443_s23 = scalar_lea.hbm %s3221_s3, 512 }
  0x27   : > { %p2444_p7 = scmp.ne.s32.totalorder %s3221_s3, %s2443_s23  ;;  %p2450_p1 = scmp.lt.u32.totalorder %s2443_s23, %s3221_s3 }
  0x29   : > { %p2446_p9 = pnand %p3198_p8, %p2444_p7 }
  0x2b   : > { %p2447_p10 = pneg %p2446_p9 }
  0x2d   : > { %p2452_p0 = pnand %p2450_p1, %p2447_p10 }
  0x2f   : > { %2455 = shalt.err (!%p2452_p0)
}
  0x30   : > { %s2456_s19 = scalar_lea.vmem %s233_s17, 512  ;;  %p2464_p11 = scmp.lt.s32.totalorder %s233_s17, %s233_s17 }
  0x31   : > { %p2457_p4 = scmp.ne.s32.totalorder %s233_s17, %s2456_s19  ;;  %p2465_p6 = scmp.lt.s32.totalorder %s2456_s19, %s2456_s19 }
  0x33   : > { %p2459_p3 = pnand %p2457_p4, %p3198_p8  ;;  %p2466_p13 = por %p2465_p6, %p2464_p11 }
  0x35   : > { %p2460_p12 = pneg %p2459_p3 }
  0x37   : > { %p2467_p5 = pnand %p2466_p13, %p2460_p12 }
  0x39   : > { %2470 = shalt.err (!%p2467_p5)
}
  0x3a   : > { %s3194_s21 = smov 128   ;;  %s3196_s22 = smov 8  }
  0x3b   : > { %2347 = dma.hbm_to_vmem [thread:$0]  (!%p2785_p2), %s3221_s3, 512, %s233_s17, [#allocation9], %s3194_s21, %s3194_s21, %s3196_s22  }
  0x3c   : > { %s2822_s19 = sshll.u32 %s2663_s27, 9  ;;  %p3222_p4 = scmp.ne.s32.totalorder %s3214_s11, 0 }
  0x3d   : > { %p3223_p5 = scmp.lt.s32.totalorder %s2663_s27, 2  ;;  %s286_s9 = sand.u32 1, %s2663_s27  }
  0x3e   : > { %s3225_s1 = sld [smem:[#allocation21_spill]]  ;;  %s290_s17 = scalar_lea.vmem [#allocation5], %s2794_s20 }
  0x3f   : > { %p2828_p6 = pnand %p3223_p5, %p3222_p4  ;;  %s297_s23 = sshll.u32 %s290_s17, 4  ;;  %s2840_s23 = int_to_ptr.vmem [resolvable:$true] %s297_s23 }
  0x40   : > { %s2842_s11 = scalar_lea.sflag [#allocation6], %s286_s9 }
  0x41   : > { %s3224_s8 = scalar_select %p2828_p6, 1, 0 }
  0x42   : > { %p2848_p12 = pneg %p2828_p6 }
  0x44   : > { %s2837_s30 = scalar_lea.hbm %s3225_s1, %s2822_s19  ;;  %s2476_s22 = scalar_lea.hbm %s3225_s1, 1024 }
  0x45   : > { %s2471_s29 = scalar_lea.hbm %s2837_s30, 512  ;;  %p2477_p3 = scmp.lt.u32.totalorder %s2837_s30, %s3225_s1 }
  0x46   : > { %p2472_p11 = scmp.ne.s32.totalorder %s2837_s30, %s2471_s29  ;;  %p2478_p7 = scmp.lt.u32.totalorder %s2476_s22, %s2471_s29 }
  0x47   : > { %s3226_s21 = scalar_select %p2848_p12, 1, 0 }
  0x48   : > { %p2474_p13 = pnand %p2848_p12, %p2472_p11  ;;  %p2479_p9 = por %p2478_p7, %p2477_p3 }
  0x49   : > { %p2480_p10 = scmp.lt.u32.totalorder %s2471_s29, %s2837_s30 }
  0x4a   : > { %p2475_p0 = pneg %p2474_p13 }
  0x4b   : > { %p2481_p1 = por %p2480_p10, %p2479_p9 }
  0x4d   : > { %p2482_p4 = pnand %p2481_p1, %p2475_p0 }
  0x4f   : > { %2485 = shalt.err (!%p2482_p4)
}
  0x50   : > { %s2486_s9 = scalar_lea.vmem %s2840_s23, 512  ;;  %s2668_s10 = smov [#allocation5]  }
  0x51   : > { %p2487_p5 = scmp.ne.s32.totalorder %s2840_s23, %s2486_s9  ;;  %s2491_s16 = sshll.u32 %s2668_s10, 4  ;;  %s2492_s16 = int_to_ptr.vmem [resolvable:$false] %s2491_s16 }
  0x52   : > { %s2493_s3 = scalar_lea.vmem %s2492_s16, 1024  ;;  %p2494_p8 = scmp.lt.s32.totalorder %s2840_s23, %s2492_s16 }
  0x53   : > { %p2489_p11 = pnand %p2487_p5, %p2848_p12  ;;  %p2495_p2 = scmp.lt.s32.totalorder %s2493_s3, %s2486_s9 }
  0x55   : > { %p2490_p13 = pneg %p2489_p11  ;;  %p2496_p3 = por %p2495_p2, %p2494_p8 }
  0x57   : > { %p2497_p7 = pnand %p2496_p3, %p2490_p13 }
  0x59   : > { %2500 = shalt.err (!%p2497_p7)
}
  0x5a   : > { %s3227_s22 = smov 8   ;;  %s3228_s29 = smov 128  }
  0x5b   : > { %2357 = dma.hbm_to_vmem [thread:$0]  (!%p2828_p6), %s2837_s30, 512, %s2840_s23, %s2842_s11, %s3228_s29, %s3228_s29, %s3227_s22  }
  0x5c   : > { %s2669_s17 = smov [#allocation10]   ;;  %s2501_s9 = scalar_lea.hbm %s3184_s5, 512 }
  0x5d   : > { %s248_s1 = sshll.u32 %s2669_s17, 4  ;;  %p2502_p2 = scmp.ne.s32.totalorder %s3184_s5, %s2501_s9  ;;  %s249_s1 = int_to_ptr.vmem [resolvable:$true] %s248_s1 }
  0x5e   : > { %p3229_p8 = scmp.ne.s32.totalorder %s3220_s18, 0  ;;  %p2508_p1 = scmp.lt.u32.totalorder %s2501_s9, %s3184_s5 }
  0x60   : > { %p3230_p0 = pneg %p3229_p8 }
  0x62   : > { %p2504_p9 = pnand %p2502_p2, %p3230_p0 }
  0x64   : > { %p2505_p10 = pneg %p2504_p9 }
  0x66   : > { %p2510_p4 = pnand %p2508_p1, %p2505_p10 }
  0x68   : > { %2513 = shalt.err (!%p2510_p4)
}
  0x69   : > { %s2514_s30 = scalar_lea.vmem %s249_s1, 512  ;;  %p3231_p11 = pmov %p3230_p0 }
  0x6a   : > { %p2515_p5 = scmp.ne.s32.totalorder %s249_s1, %s2514_s30  ;;  %p2522_p7 = scmp.lt.s32.totalorder %s249_s1, %s249_s1 }
  0x6b   : > { %p2523_p6 = scmp.lt.s32.totalorder %s2514_s30, %s2514_s30 }
  0x6c   : > { %p2517_p13 = pnand %p2515_p5, %p3231_p11 }
  0x6d   : > { %p2524_p12 = por %p2523_p6, %p2522_p7 }
  0x6e   : > { %p2518_p3 = pneg %p2517_p13 }
  0x70   : > { %p2525_p0 = pnand %p2524_p12, %p2518_p3 }
  0x72   : > { %2528 = shalt.err (!%p2525_p0)
}
  0x73   : > { %2350 = dma.hbm_to_vmem [thread:$0]  (!%p3229_p8), %s3184_s5, 512, %s249_s1, [#allocation9], %s3228_s29, %s3228_s29, %s3227_s22  }
  0x74   : > { %s2902_s17 = scalar_lea.hbm %s3179_s0, %s2822_s19  ;;  %s269_s18 = scalar_lea.vmem [#allocation2], %s2794_s20 }
  0x75   : > { %s276_s10 = sshll.u32 %s269_s18, 4  ;;  %s3232_s9 = sand.u32 1, %s2659_s26   ;;  %s2905_s10 = int_to_ptr.vmem [resolvable:$true] %s276_s10 }
  0x76   : > { %s2909_s16 = scalar_lea.sflag [#allocation3], %s3232_s9  ;;  %s2529_s3 = scalar_lea.hbm %s2902_s17, 512 }
  0x77   : > { %p2530_p6 = scmp.ne.s32.totalorder %s2902_s17, %s2529_s3  ;;  %p3233_p12 = scmp.ne.s32.totalorder %s3226_s21, 0 }
  0x78   : > { %s2534_s24 = scalar_lea.hbm %s3179_s0, 1024  ;;  %p2535_p9 = scmp.lt.u32.totalorder %s2902_s17, %s3179_s0 }
  0x79   : > { %p2532_p2 = pnand %p2530_p6, %p3233_p12  ;;  %p2536_p10 = scmp.lt.u32.totalorder %s2534_s24, %s2529_s3 }
  0x7a   : > { %p2538_p4 = scmp.lt.u32.totalorder %s2529_s3, %s2902_s17 }
  0x7b   : > { %p2533_p8 = pneg %p2532_p2  ;;  %p2537_p1 = por %p2536_p10, %p2535_p9 }
  0x7d   : > { %p2539_p5 = por %p2538_p4, %p2537_p1 }
  0x7f   : > { %p2540_p11 = pnand %p2539_p5, %p2533_p8 }
  0x81   : > { %2543 = shalt.err (!%p2540_p11)
}
  0x82   : > { %s2544_s23 = scalar_lea.vmem %s2905_s10, 512  ;;  %s2670_s18 = smov [#allocation2]  }
  0x83   : > { %p2545_p13 = scmp.ne.s32.totalorder %s2905_s10, %s2544_s23  ;;  %s2549_s9 = sshll.u32 %s2670_s18, 4  ;;  %s2550_s9 = int_to_ptr.vmem [resolvable:$false] %s2549_s9 }
  0x84   : > { %s2551_s1 = scalar_lea.vmem %s2550_s9, 1024  ;;  %p2552_p0 = scmp.lt.s32.totalorder %s2905_s10, %s2550_s9 }
  0x85   : > { %p2547_p3 = pnand %p2545_p13, %p3233_p12  ;;  %p2553_p6 = scmp.lt.s32.totalorder %s2551_s1, %s2544_s23 }
  0x87   : > { %p2548_p7 = pneg %p2547_p3  ;;  %p2554_p2 = por %p2553_p6, %p2552_p0 }
  0x89   : > { %p2555_p9 = pnand %p2554_p2, %p2548_p7 }
  0x8b   : > { %2558 = shalt.err (!%p2555_p9)
}
  0x8c   : > { %p3234_p8 = scmp.ne.s32.totalorder %s3224_s8, 0  ;;  %s2940_s24 = scalar_lea.hbm %s3181_s2, %s2822_s19 }
  0x8d   : > { %s311_s27 = scalar_lea.vmem [#allocation7], %s2794_s20  ;;  %s2559_s23 = scalar_lea.hbm %s2940_s24, 512 }
  0x8e   : > { %2354 = dma.hbm_to_vmem [thread:$0]  (!%p3234_p8), %s2902_s17, 512, %s2905_s10, %s2909_s16, %s3228_s29, %s3228_s29, %s3227_s22  }
  0x8f   : > { %s318_s14 = sshll.u32 %s311_s27, 4  ;;  %p2560_p10 = scmp.ne.s32.totalorder %s2940_s24, %s2559_s23  ;;  %s2943_s14 = int_to_ptr.vmem [resolvable:$true] %s318_s14 }
  0x90   : > { %s2564_s10 = scalar_lea.hbm %s3181_s2, 1024  ;;  %p2565_p5 = scmp.lt.u32.totalorder %s2940_s24, %s3181_s2 }
  0x91   : > { %p2562_p1 = pnand %p2560_p10, %p3233_p12  ;;  %p2566_p11 = scmp.lt.u32.totalorder %s2564_s10, %s2559_s23 }
  0x92   : > { %p2568_p3 = scmp.lt.u32.totalorder %s2559_s23, %s2940_s24 }
  0x93   : > { %p2563_p4 = pneg %p2562_p1  ;;  %p2567_p13 = por %p2566_p11, %p2565_p5 }
  0x95   : > { %p2569_p7 = por %p2568_p3, %p2567_p13 }
  0x97   : > { %p2570_p0 = pnand %p2569_p7, %p2563_p4 }
  0x99   : > { %2573 = shalt.err (!%p2570_p0)
}
  0x9a   : > { %s2574_s20 = scalar_lea.vmem %s2943_s14, 512  ;;  %s2671_s9 = smov [#allocation7]  }
  0x9b   : > { %p2575_p6 = scmp.ne.s32.totalorder %s2943_s14, %s2574_s20  ;;  %s2579_s1 = sshll.u32 %s2671_s9, 4  ;;  %s2580_s1 = int_to_ptr.vmem [resolvable:$false] %s2579_s1 }
  0x9c   : > { %s2581_s3 = scalar_lea.vmem %s2580_s1, 1024  ;;  %p2582_p10 = scmp.lt.s32.totalorder %s2943_s14, %s2580_s1 }
  0x9d   : > { %p2577_p2 = pnand %p2575_p6, %p3233_p12  ;;  %p2583_p1 = scmp.lt.s32.totalorder %s2581_s3, %s2574_s20 }
  0x9f   : > { %p2578_p9 = pneg %p2577_p2  ;;  %p2584_p5 = por %p2583_p1, %p2582_p10 }
  0xa1   : > { %p2585_p11 = pnand %p2584_p5, %p2578_p9 }
  0xa3   : > { %2588 = shalt.err (!%p2585_p11)
}
  0xa4   : > { %2360 = dma.hbm_to_vmem [thread:$0]  (!%p3234_p8), %s2940_s24, 512, %s2943_s14, %s2842_s11, %s3228_s29, %s3228_s29, %s3227_s22  }
  0xa5   : > { %p3235_p12 = scmp.ne.s32.totalorder %s3219_s15, 0 }
  0xa6   : > { %s2973_s21 = sand.u32 (!%p3235_p12), 1, %s2655_s25   ;;  %p3236_p4 = scmp.ne.s32.totalorder (!%p3235_p12), %s3215_s12, 0 }
  0xa7   : > { %330 = sbr.rel (%p3235_p12) target bundleno = 1681 (0x691), region = 48  ;;  %s2111_s30 = sshll.u32 (!%p3235_p12), %s2973_s21, 5 }
  0xa8   : > { %s333_s27 = scalar_lea.sflag (!%p3235_p12), [#allocation3], %s2973_s21  ;;  %s336_s23 = scalar_lea.vmem (!%p3235_p12), [#allocation2], %s2111_s30 }
  0xae   : > { %2634 = dma.done.wait (%p3236_p4), %s333_s27, 512  }
  0xaf   : > { %2636 = vsyncadd (%p3236_p4), %s333_s27, 4294966784  ;;  %s341_s8 = sand.u32 1, %s2738_s28   ;;  %s2982_s15 = scalar_lea.vmem [#allocation5], %s2111_s30 }
  0xb0   : > { %s342_s11 = scalar_lea.sflag [#allocation6], %s341_s8 }
  0xb1   : > { %2638 = dma.done.wait (%p3236_p4), %s342_s11, 1024  }
  0xb2   : > { %2640 = vsyncadd (%p3236_p4), %s342_s11, 4294966272  ;;  %s2988_s22 = scalar_lea.vmem [#allocation7], %s2111_s30  ;;  %p3237_p8 = scmp.eq.s32.totalorder %s2738_s28, 0 }
  0xb4   : > { %2642 = dma.done.wait (%p3237_p8), [#allocation9], 1024   ;;  %p3238_p13 = pmov %p3237_p8 }
  0xb5   : > { %vm464_vm0 = vcmask 261120   ;;  %v460_v0 = vld [vmem:[#allocation8] sm:$0xff]  ;;  %v461_v1 = vld [vmem:[#allocation8 + $0x8] sm:$0xff]  ;;  %v462_v2 = vld [vmem:[#allocation8 + $0x10] sm:$0xff]  ;;  %v2672_v10 = vmov 0.0   ;;  %vm2673_vm1 = vmmov 0  }
  0xb6   : > { %2644 = vsyncadd (%p3238_p13), [#allocation9], 4294966272  ;;  %v2312_v3 = vpack.c.bf16 %v461_v1, %v460_v0  ;;  %v463_v4 = vld [vmem:[#allocation8 + $0x18] sm:$0xff]  ;;  %v2994_v5 = vld [vmem:[%s336_s23] sm:$0xff]  ;;  %2218 = vmatprep.subr.mxu1 %v2672_v10  ;;  %2220 = vmatprep.mubr.msk.f32.mxu1 %vm2673_vm1, %v2672_v10  ;;  %vm419_vm2 = vcmask 64512   ;;  %vm1605_vm3 = vcmask 57344  }
  0xb7   : > { %v2316_v6 = vpack.c.bf16 %v463_v4, %v462_v2  ;;  %2212 = vmatprep.mubr.msk.f32.mxu0 %vm464_vm0, %v2994_v5  ;;  %v2998_v7 = vld [vmem:[%s336_s23 + $0x8] sm:$0xff]  ;;  %v3000_v8 = vld [vmem:[%s336_s23 + $0x10] sm:$0xff]  ;;  %v3006_v9 = vld [vmem:[%s336_s23 + $0x18] sm:$0xff]  ;;  %s2116_s18 = sshll.u32 %s2973_s21, 2  ;;  %vm1942_vm4 = vcmask 253952   ;;  %s2155_s16 = sshll.u32 %s2738_s28, 6 }
  0xb8   : > { %2313 = vmatprep.subr.bf16.mxu0 %v2312_v3  ;;  %v411_v11 = vld [vmem:[%s2982_s15] sm:$0xff]  ;;  %v413_v12 = vld [vmem:[%s2982_s15 + $0x10] sm:$0xff]  ;;  %v412_v15 = vld [vmem:[%s2982_s15 + $0x8] sm:$0xff]  ;;  %s402_s17 = scalar_lea.vmem [#allocation11], %s2116_s18  ;;  %s3133_s9 = scalar_lea.hbm %s3186_s7, %s2155_s16 }
  0xb9   : > { %2315 = vmatpush3.bf16.msra.mxu0 %v2312_v3  ;;  %v420_v13 = vsel %vm419_vm2, %v411_v11, 0.0  ;;  %v426_v14 = vsel %vm419_vm2, %v413_v12, 0.0  ;;  %v414_v16 = vld [vmem:[%s2982_s15 + $0x18] sm:$0xff]  ;;  %v423_v17 = vsel %vm419_vm2, %v412_v15, 0.0  ;;  %v873_v23 = vld [vmem:[#allocation10] sm:$0xff]  ;;  %v874_v24 = vld [vmem:[#allocation10 + $0x8] sm:$0xff] }
  0xba   : > { %2317 = vmatprep.subr.bf16.mxu0 %v2316_v6  ;;  %421 = vadd.xlane.f32.xlu0 %v420_v13  ;;  %v429_v18 = vsel %vm419_vm2, %v414_v16, 0.0  ;;  %v2320_v25 = vpack.c.bf16 %v874_v24, %v873_v23  ;;  %v875_v26 = vld [vmem:[#allocation10 + $0x10] sm:$0xff]  ;;  %v876_v27 = vld [vmem:[#allocation10 + $0x18] sm:$0xff]  ;;  %v2125_v39 = vld [vmem:[%s3183_s4] ss:$0 sm:$0xff]  ;;  %s1961_s10 = sshll.u32 %s402_s17, 4  ;;  %s3128_s10 = int_to_ptr.vmem [resolvable:$true] %s1961_s10 }
  0xbb   : > { %427 = vadd.xlane.f32.xlu1 %v426_v14  ;;  %v2324_v28 = vpack.c.bf16 %v876_v27, %v875_v26  ;;  %v415_v62 = vld [vmem:[%s2988_s22] sm:$0xff]  ;;  %v416_v63 = vld [vmem:[%s2988_s22 + $0x8] sm:$0xff]  ;;  %v417_v2 = vld [vmem:[%s2988_s22 + $0x10] sm:$0xff]  ;;  %s1948_s28 = scalar_lea.sflag [#allocation4], %s2973_s21  ;;  %s2589_s1 = scalar_lea.vmem %s3128_s10, 64 }
  0xbc   : > { %v440_v0 = vsel %vm419_vm2, %v415_v62, 0.0  ;;  %v443_v1 = vsel %vm419_vm2, %v416_v63, 0.0  ;;  %v418_v3 = vld [vmem:[%s2988_s22 + $0x18] sm:$0xff]  ;;  %p2590_p3 = scmp.ne.s32.totalorder %s3128_s10, %s2589_s1  ;;  %p3239_p7 = scmp.ne.s32.totalorder %s3216_s13, 0 }
  0xbd   : > { %2319 = vmatpush3.bf16.msra.mxu0 %v2316_v6  ;;  %v449_v4 = vsel %vm419_vm2, %v418_v3, 0.0  ;;  %v446_v6 = vsel %vm419_vm2, %v417_v2, 0.0  ;;  %s2674_s3 = smov [#allocation11]  }
  0xbe   : > { %424 = vadd.xlane.f32.xlu0 %v423_v17  ;;  %2321 = vmatprep.subr.bf16.mxu0 %v2320_v25  ;;  %p2591_p0 = pnand %p2590_p3, %p3239_p7  ;;  %s2593_s30 = sshll.u32 %s2674_s3, 4  ;;  %s2594_s30 = int_to_ptr.vmem [resolvable:$false] %s2593_s30 }
  0xbf   : > { %430 = vadd.xlane.f32.xlu1 %v429_v18  ;;  %s2595_s27 = scalar_lea.vmem %s2594_s30, 128  ;;  %p2596_p2 = scmp.lt.s32.totalorder %s3128_s10, %s2594_s30 }
  0xc0   : > { %2213 = vmatmul.mubr.msk.f32.vlgmr.msra.gmra.mrb[0].mxu0 %vm464_vm0, %v2998_v7  ;;  %p2592_p6 = pneg %p2591_p0  ;;  %p2597_p9 = scmp.lt.s32.totalorder %s2595_s27, %s2589_s1 }
  0xc1   : > { %2215 = vmatprep.mubr.msk.f32.mxu0 %vm464_vm0, %v3000_v8  ;;  %2323 = vmatpush3.bf16.msra.mxu0 %v2320_v25  ;;  %v2134_v25 = vld [vmem:[%s3185_s6] ss:$0 sm:$0xff] }
  0xc2   : > { %2325 = vmatprep.subr.bf16.mxu0 %v2324_v28  ;;  %441 = vadd.xlane.f32.xlu0 %v440_v0  ;;  %p2598_p10 = por %p2597_p9, %p2596_p2 }
  0xc3   : > { %444 = vadd.xlane.f32.xlu1 %v443_v1 }
  0xc4   : > { %2216 = vmatmul.mubr.msk.f32.gmra.mrb[2].mxu0 %vm464_vm0, %v3006_v9  ;;  %p2599_p1 = pnand %p2598_p10, %p2592_p6 }
  0xc5   : > { %2327 = vmatpush3.bf16.msra.mxu0 %v2324_v28 }
  0xc6   : > { %2262 = vmatprep.subr.mxu0 %v2672_v10  ;;  %447 = vadd.xlane.f32.xlu0 %v446_v6 }
  0xc7   : > { %450 = vadd.xlane.f32.xlu1 %v449_v4 }
 0x147   : > { %v422_v29 = vpop.xlane.xlu0 %421 }
 0x148   : > { %v432_v30 = vadd.f32 1.0, %v422_v29  ;;  %v428_v32 = vpop.xlane.xlu1 %427 }
 0x149   : > { %v434_v34 = vadd.f32 1.0, %v428_v32 }
 0x14a   : > { %2411 = vrcp.f32 %v432_v30 }
 0x14b   : > { %v425_v31 = vpop.xlane.xlu0 %424 }
 0x14c   : > { %v433_v33 = vadd.f32 1.0, %v425_v31  ;;  %v431_v35 = vpop.xlane.xlu1 %430 }
 0x14d   : > { %v435_v36 = vadd.f32 1.0, %v431_v35 }
 0x14e   : > { %2413 = vrcp.f32 %v433_v33 }
 0x14f   : > { %2415 = vrcp.f32 %v434_v34 }
 0x150   : > { %2417 = vrcp.f32 %v435_v36 }
 0x154   : > { %v2412_v37 = vpop.eup %2411 }
 0x158   : > { %v2414_v42 = vpop.eup %2413 }
 0x159   : > { %v2416_v48 = vpop.eup %2415 }
 0x15a   : > { %v2418_v54 = vpop.eup %2417 }
 0x193   : > { %v2214_v19 = vpop.f32.mrb[0].mxu0 }
 0x194   : > { %v543_v20 = vpop.f32.mrb[1].mxu0 }
 0x195   : > { %2219 = vmatpush3.msra.mxu1 %v543_v20 }
 0x196   : > { %2221 = vmatmul.mubr.msk.f32.vlgmr.msra.gmra.mrb[0].mxu1 %vm419_vm2, %v411_v11  ;;  %2223 = vmatprep.subr.mxu1 %v2672_v10 }
 0x197   : > { %2224 = vmatpush3.msra.mxu1 %v2214_v19  ;;  %2225 = vmatprep.mubr.msk.f32.mxu1 %vm2673_vm1, %v2672_v10  ;;  %v2217_v21 = vpop.f32.mrb[2].mxu0 }
 0x198   : > { %v553_v22 = vpop.f32.mrb[3].mxu0  ;;  %2228 = vmatprep.subr.mxu1 %v2672_v10 }
 0x19a   : > { %2226 = vmatmul.mubr.msk.f32.vlgmr.msra.gmra.mrb[2].mxu1 %vm419_vm2, %v412_v15  ;;  %v442_v15 = vpop.xlane.xlu0 %441 }
 0x19b   : > { %2229 = vmatpush3.msra.mxu1 %v553_v22  ;;  %2230 = vmatprep.mubr.msk.f32.mxu1 %vm2673_vm1, %v2672_v10  ;;  %v452_v17 = vadd.f32 1.0, %v442_v15 }
 0x19c   : > { %2233 = vmatprep.subr.mxu1 %v2672_v10 }
 0x19d   : > { %2419 = vrcp.f32 %v452_v17 }
 0x19e   : > { %2231 = vmatmul.mubr.msk.f32.vlgmr.msra.gmra.mrb[4].mxu1 %vm419_vm2, %v413_v12  ;;  %v448_v20 = vpop.xlane.xlu0 %447 }
 0x19f   : > { %2234 = vmatpush3.msra.mxu1 %v2217_v21  ;;  %2235 = vmatprep.mubr.msk.f32.mxu1 %vm2673_vm1, %v2672_v10  ;;  %v454_v22 = vadd.f32 1.0, %v448_v20 }
 0x1a0   : > { %2252 = vmatprep.subr.mxu1 %v2672_v10 }
 0x1a2   : > { %2236 = vmatmul.mubr.msk.f32.vlgmr.msra.gmra.mrb[6].mxu1 %vm419_vm2, %v414_v16  ;;  %v445_v16 = vpop.xlane.xlu1 %444 }
 0x1a3   : > { %2254 = vmatprep.mubr.msk.f32.mxu1 %vm2673_vm1, %v2672_v10  ;;  %v453_v18 = vadd.f32 1.0, %v445_v16 }
 0x1a5   : > { %2421 = vrcp.f32 %v453_v18 }
 0x1a6   : > { %v451_v19 = vpop.xlane.xlu1 %450 }
 0x1a7   : > { %v455_v21 = vadd.f32 1.0, %v451_v19  ;;  %v2420_v23 = vpop.eup %2419 }
 0x1a9   : > { %2423 = vrcp.f32 %v455_v21 }
 0x1aa   : > { %2425 = vrcp.f32 %v454_v22 }
 0x1af   : > { %v2422_v28 = vpop.eup %2421 }
 0x1b3   : > { %v2424_v31 = vpop.eup %2423 }
 0x1b4   : > { %v2426_v35 = vpop.eup %2425 }
 0x269   : > { %v631_v38 = vpop.f32.mrb[0].mxu1 }
 0x26a   : > { %v854_v40 = vmul.f32 %v2412_v37, %v631_v38  ;;  %v2222_v41 = vpop.f32.mrb[1].mxu1 }
 0x26c   : > { %v865_v43 = vadd.f32 %v2125_v39, %v854_v40 }
 0x26d   : > { %v704_v44 = vpop.f32.mrb[2].mxu1 }
 0x26e   : > { %v869_v45 = vmax.f32 %v865_v43, 0.0  ;;  %v855_v46 = vmul.f32 %v2414_v42, %v704_v44  ;;  %v2227_v47 = vpop.f32.mrb[3].mxu1 }
 0x270   : > { %v866_v49 = vadd.f32 %v2125_v39, %v855_v46  ;;  %2246 = vmatprep.mubr.msk.f32.mxu0 %vm464_vm0, %v869_v45 }
 0x271   : > { %v777_v50 = vpop.f32.mrb[4].mxu1 }
 0x272   : > { %v870_v51 = vmax.f32 %v866_v49, 0.0  ;;  %v856_v52 = vmul.f32 %v2416_v48, %v777_v50  ;;  %v2232_v53 = vpop.f32.mrb[5].mxu1 }
 0x274   : > { %v867_v55 = vadd.f32 %v2125_v39, %v856_v52  ;;  %2247 = vmatmul.mubr.msk.f32.vlgmr.msra.gmra.mrb[4].mxu0 %vm464_vm0, %v870_v51 }
 0x275   : > { %v850_v56 = vpop.f32.mrb[6].mxu1 }
 0x276   : > { %v871_v57 = vmax.f32 %v867_v55, 0.0  ;;  %v857_v58 = vmul.f32 %v2418_v54, %v850_v56  ;;  %v2237_v59 = vpop.f32.mrb[7].mxu1 }
 0x278   : > { %v868_v60 = vadd.f32 %v2125_v39, %v857_v58  ;;  %2249 = vmatprep.mubr.msk.f32.mxu0 %vm464_vm0, %v871_v57 }
 0x27a   : > { %v872_v61 = vmax.f32 %v868_v60, 0.0 }
 0x27c   : > { %2250 = vmatmul.mubr.msk.f32.gmra.mrb[6].mxu0 %vm464_vm0, %v872_v61 }
 0x27d   : > { %2264 = vmatprep.mubr.msk.f32.mxu0 %vm2673_vm1, %v2672_v10 }
 0x347   : > { %v2248_v11 = vpop.f32.mrb[4].mxu0 }
 0x348   : > { %v955_v12 = vpop.f32.mrb[5].mxu0 }
 0x349   : > { %2253 = vmatpush3.msra.mxu1 %v955_v12 }
 0x34a   : > { %2255 = vmatmul.mubr.msk.f32.vlgmr.msra.gmra.mrb[8].mxu1 %vm419_vm2, %v415_v62  ;;  %2257 = vmatprep.subr.mxu1 %v2672_v10 }
 0x34b   : > { %2258 = vmatpush3.msra.mxu1 %v2248_v11  ;;  %2259 = vmatprep.mubr.msk.f32.mxu1 %vm2673_vm1, %v2672_v10 }
 0x34c   : > { %2267 = vmatprep.subr.mxu1 %v2672_v10 }
 0x34e   : > { %2260 = vmatmul.mubr.msk.f32.vlgmr.msra.gmra.mrb[10].mxu1 %vm419_vm2, %v416_v63 }
 0x34f   : > { %v2251_v13 = vpop.f32.mrb[6].mxu0  ;;  %2269 = vmatprep.mubr.msk.f32.mxu1 %vm2673_vm1, %v2672_v10 }
 0x350   : > { %v965_v14 = vpop.f32.mrb[7].mxu0  ;;  %2268 = vmatpush3.msra.mxu1 %v2251_v13 }
 0x351   : > { %2263 = vmatpush3.msra.mxu0 %v965_v14  ;;  %2277 = vmatprep.subr.mxu1 %v2672_v10 }
 0x352   : > { %2265 = vmatmul.mubr.msk.f32.vlgmr.msra.gmra.mrb[8].mxu0 %vm419_vm2, %v417_v2  ;;  %2270 = vmatmul.mubr.msk.f32.vlgmr.msra.gmra.mrb[12].mxu1 %vm419_vm2, %v418_v3 }
 0x353   : > { %2272 = vmatprep.subr.mxu0 %v2672_v10  ;;  %2274 = vmatprep.mubr.msk.f32.mxu0 %vm2673_vm1, %v2672_v10 }
 0x354   : > { %2279 = vmatprep.mubr.msk.f32.mxu1 %vm2673_vm1, %v2672_v10 }
 0x357   : > { %2278 = vmatpush3.xpose.msk.msra.mxu1 %vm464_vm0, %v2998_v7 }
 0x358   : > { %2273 = vmatpush3.xpose.msk.msra.mxu0 %vm464_vm0, %v2994_v5  ;;  %2287 = vmatprep.subr.mxu1 %v2672_v10 }
 0x359   : > { %2282 = vmatprep.subr.mxu0 %v2672_v10 }
 0x41d   : > { %v1043_v24 = vpop.f32.mrb[8].mxu1 }
 0x41e   : > { %v1266_v26 = vmul.f32 %v2420_v23, %v1043_v24  ;;  %v2256_v27 = vpop.f32.mrb[9].mxu1 }
 0x420   : > { %v1277_v29 = vadd.f32 %v2134_v25, %v1266_v26 }
 0x421   : > { %v1116_v30 = vpop.f32.mrb[10].mxu1 }
 0x422   : > { %v1281_v32 = vmax.f32 %v1277_v29, 0.0  ;;  %v1267_v33 = vmul.f32 %v2422_v28, %v1116_v30  ;;  %v2261_v34 = vpop.f32.mrb[11].mxu1 }
 0x424   : > { %v1285_v36 = vsel %vm464_vm0, %v1281_v32, 0.0  ;;  %v1278_v37 = vadd.f32 %v2134_v25, %v1267_v33 }
 0x425   : > { %v1286_v38 = vrot.slane %v1285_v36, 4  ;;  %v1189_v39 = vpop.f32.mrb[8].mxu0  ;;  %v1262_v40 = vpop.f32.mrb[12].mxu1 }
 0x426   : > { %v1282_v41 = vmax.f32 %v1278_v37, 0.0  ;;  %v1268_v42 = vmul.f32 %v2426_v35, %v1189_v39  ;;  %v1269_v43 = vmul.f32 %v2424_v31, %v1262_v40  ;;  %v2266_v44 = vpop.f32.mrb[9].mxu0  ;;  %v2271_v45 = vpop.f32.mrb[13].mxu1 }
 0x427   : > { %v1287_v46 = vadd.f32 %v1286_v38, %v1285_v36 }
 0x428   : > { %v1292_v47 = vsel %vm464_vm0, %v1282_v41, 0.0  ;;  %v1279_v48 = vadd.f32 %v2134_v25, %v1268_v42  ;;  %v1280_v49 = vadd.f32 %v2134_v25, %v1269_v43 }
 0x429   : > { %v1288_v50 = vrot.slane %v1287_v46, 2  ;;  %v1293_v51 = vrot.slane %v1292_v47, 4 }
 0x42a   : > { %v1283_v52 = vmax.f32 %v1279_v48, 0.0  ;;  %v1284_v53 = vmax.f32 %v1280_v49, 0.0 }
 0x42b   : > { %v1289_v54 = vadd.f32 %v1288_v50, %v1287_v46  ;;  %v1294_v55 = vadd.f32 %v1293_v51, %v1292_v47 }
 0x42c   : > { %v1299_v56 = vsel %vm464_vm0, %v1283_v52, 0.0  ;;  %v1306_v57 = vsel %vm464_vm0, %v1284_v53, 0.0 }
 0x42d   : > { %v1290_v58 = vrot.slane %v1289_v54, 1  ;;  %v1295_v59 = vrot.slane %v1294_v55, 2  ;;  %v1300_v60 = vrot.slane %v1299_v56, 4  ;;  %v1307_v61 = vrot.slane %v1306_v57, 4 }
 0x42f   : > { %v1291_v62 = vadd.f32 %v1290_v58, %v1289_v54  ;;  %v1296_v63 = vadd.f32 %v1295_v59, %v1294_v55  ;;  %v1301_v0 = vadd.f32 %v1300_v60, %v1299_v56  ;;  %v1308_v1 = vadd.f32 %v1307_v61, %v1306_v57 }
 0x431   : > { %v1297_v2 = vrot.slane %v1296_v63, 1  ;;  %v1302_v3 = vrot.slane %v1301_v0, 2  ;;  %v1309_v4 = vrot.slane %v1308_v1, 2  ;;  %2275 = vmatmul.mubr.msk.f32.vlgmr.msra.gmra.mrb[10].mxu0 %vm464_vm0, %v1291_v62 }
 0x432   : > { %2283 = vmatpush3.xpose.msk.msra.mxu0 %vm464_vm0, %v3000_v8  ;;  %2284 = vmatprep.mubr.msk.f32.mxu0 %vm2673_vm1, %v2672_v10 }
 0x433   : > { %v1298_v6 = vadd.f32 %v1297_v2, %v1296_v63  ;;  %v1303_v11 = vadd.f32 %v1302_v3, %v1301_v0  ;;  %v1310_v12 = vadd.f32 %v1309_v4, %v1308_v1  ;;  %2292 = vmatprep.subr.mxu0 %v2672_v10 }
 0x435   : > { %v1304_v13 = vrot.slane %v1303_v11, 1  ;;  %v1311_v14 = vrot.slane %v1310_v12, 1  ;;  %2280 = vmatmul.mubr.msk.f32.vlgmr.msra.gmra.mrb[14].mxu1 %vm464_vm0, %v1298_v6 }
 0x436   : > { %2288 = vmatpush3.xpose.msk.msra.mxu1 %vm464_vm0, %v3006_v9  ;;  %2289 = vmatprep.mubr.msk.f32.mxu1 %vm2673_vm1, %v2672_v10 }
 0x437   : > { %v1305_v15 = vadd.f32 %v1304_v13, %v1303_v11  ;;  %v1312_v16 = vadd.f32 %v1311_v14, %v1310_v12  ;;  %2297 = vmatprep.subr.mxu1 %v2672_v10 }
 0x439   : > { %2285 = vmatmul.mubr.msk.f32.vlgmr.msra.gmra.mrb[12].mxu0 %vm464_vm0, %v1305_v15  ;;  %2290 = vmatmul.mubr.msk.f32.vlgmr.msra.gmra.mrb[16].mxu1 %vm464_vm0, %v1312_v16 }
 0x43a   : > { %2293 = vmatpush3.msra.mxu0 %v2994_v5  ;;  %2294 = vmatprep.mubr.msk.f32.mxu0 %vm2673_vm1, %v2672_v10 }
 0x43b   : > { %2298 = vmatpush3.msra.mxu1 %v2998_v7  ;;  %2299 = vmatprep.mubr.msk.f32.mxu1 %vm2673_vm1, %v2672_v10 }
 0x43c   : > { %2302 = vmatprep.subr.mxu0 %v2672_v10  ;;  %2307 = vmatprep.subr.mxu1 %v2672_v10 }
 0x504   : > { %v1382_v17 = vpop.f32.mrb[10].mxu0 }
 0x505   : > { %v2276_v18 = vpop.f32.mrb[11].mxu0  ;;  %v1606_v19 = vsel %vm1605_vm3, %v1382_v17, -inf }
 0x506   : > { %1607 = vmax.xlane.f32.xlu0 %v1606_v19 }
 0x508   : > { %v1455_v20 = vpop.f32.mrb[14].mxu1 }
 0x509   : > { %v2281_v5 = vpop.f32.mrb[15].mxu1  ;;  %v1609_v21 = vsel %vm1605_vm3, %v1455_v20, -inf }
 0x50a   : > { %1610 = vmax.xlane.f32.xlu1 %v1609_v21 }
 0x50c   : > { %v1528_v22 = vpop.f32.mrb[12].mxu0  ;;  %v1601_v7 = vpop.f32.mrb[16].mxu1 }
 0x50d   : > { %v2286_v23 = vpop.f32.mrb[13].mxu0  ;;  %v2291_v24 = vpop.f32.mrb[17].mxu1  ;;  %v1612_v25 = vsel %vm1605_vm3, %v1528_v22, -inf  ;;  %v1615_v26 = vsel %vm1605_vm3, %v1601_v7, -inf }
 0x50e   : > { %1613 = vmax.xlane.f32.xlu0 %v1612_v25  ;;  %1616 = vmax.xlane.f32.xlu1 %v1615_v26 }
 0x593   : > { %v1608_v27 = vpop.xlane.xlu0 %1607 }
 0x594   : > { %v1618_v28 = vsub.f32 %v1382_v17, %v1608_v27 }
 0x596   : > { %v1622_v29 = vmul.f32 1.442695, %v1618_v28 }
 0x597   : > { %v1611_v30 = vpop.xlane.xlu1 %1610 }
 0x598   : > { %2427 = vpow2.f32 %v1622_v29  ;;  %v1619_v31 = vsub.f32 %v1455_v20, %v1611_v30 }
 0x59a   : > { %v1624_v32 = vmul.f32 1.442695, %v1619_v31 }
 0x59b   : > { %v1614_v33 = vpop.xlane.xlu0 %1613  ;;  %v1617_v34 = vpop.xlane.xlu1 %1616 }
 0x59c   : > { %2429 = vpow2.f32 %v1624_v32  ;;  %v1620_v35 = vsub.f32 %v1528_v22, %v1614_v33  ;;  %v1621_v36 = vsub.f32 %v1601_v7, %v1617_v34 }
 0x59e   : > { %v1626_v37 = vmul.f32 1.442695, %v1620_v35  ;;  %v1628_v38 = vmul.f32 1.442695, %v1621_v36 }
 0x5a0   : > { %2431 = vpow2.f32 %v1626_v37 }
 0x5a1   : > { %2433 = vpow2.f32 %v1628_v38 }
 0x5a2   : > { %v2428_v39 = vpop.eup %2427 }
 0x5a3   : > { %2295 = vmatmul.mubr.msk.f32.vlgmr.msra.gmra.mrb[14].mxu0 %vm419_vm2, %v2428_v39  ;;  %v1630_v40 = vsel %vm1605_vm3, %v2428_v39, 0.0 }
 0x5a4   : > { %1631 = vadd.xlane.f32.xlu0 %v1630_v40  ;;  %2303 = vmatpush3.msra.mxu0 %v3000_v8 }
 0x5a5   : > { %2304 = vmatprep.mubr.msk.f32.mxu0 %vm2673_vm1, %v2672_v10 }
 0x5a6   : > { %v2430_v41 = vpop.eup %2429 }
 0x5a7   : > { %2300 = vmatmul.mubr.msk.f32.vlgmr.msra.gmra.mrb[18].mxu1 %vm419_vm2, %v2430_v41  ;;  %v1633_v42 = vsel %vm1605_vm3, %v2430_v41, 0.0 }
 0x5a8   : > { %1634 = vadd.xlane.f32.xlu1 %v1633_v42  ;;  %2308 = vmatpush3.msra.mxu1 %v3006_v9 }
 0x5a9   : > { %2309 = vmatprep.mubr.msk.f32.mxu1 %vm2673_vm1, %v2672_v10 }
 0x5aa   : > { %v2432_v43 = vpop.eup %2431 }
 0x5ab   : > { %v2434_v44 = vpop.eup %2433  ;;  %2305 = vmatmul.mubr.msk.f32.vlgmr.msra.gmra.mrb[16].mxu0 %vm419_vm2, %v2432_v43  ;;  %v1636_v8 = vsel %vm1605_vm3, %v2432_v43, 0.0 }
 0x5ac   : > { %2310 = vmatmul.mubr.msk.f32.vlgmr.msra.gmra.mrb[20].mxu1 %vm419_vm2, %v2434_v44  ;;  %1637 = vadd.xlane.f32.xlu0 %v1636_v8  ;;  %v1639_v45 = vsel %vm1605_vm3, %v2434_v44, 0.0 }
 0x5ad   : > { %1640 = vadd.xlane.f32.xlu1 %v1639_v45 }
 0x631   : > { %v1632_v46 = vpop.xlane.xlu0 %1631 }
 0x632   : > { %2435 = vrcp.f32 %v1632_v46 }
 0x635   : > { %v1635_v47 = vpop.xlane.xlu1 %1634 }
 0x636   : > { %2437 = vrcp.f32 %v1635_v47 }
 0x639   : > { %v1638_v9 = vpop.xlane.xlu0 %1637 }
 0x63a   : > { %v1641_v48 = vpop.xlane.xlu1 %1640  ;;  %2439 = vrcp.f32 %v1638_v9 }
 0x63b   : > { %2441 = vrcp.f32 %v1641_v48 }
 0x63c   : > { %v2436_v10 = vpop.eup %2435 }
 0x640   : > { %v2438_v52 = vpop.eup %2437 }
 0x644   : > { %v2440_v56 = vpop.eup %2439 }
 0x645   : > { %v2442_v58 = vpop.eup %2441 }
 0x676   : > { %v1715_v49 = vpop.f32.mrb[14].mxu0 }
 0x677   : > { %v1938_v50 = vmul.f32 %v2436_v10, %v1715_v49  ;;  %v2296_v51 = vpop.f32.mrb[15].mxu0 }
 0x679   : > { %1943 = vst.msk [vmem:[%s402_s17] sm:$0x1] %vm1942_vm4, %v1938_v50 }
 0x67a   : > { %v1788_v53 = vpop.f32.mrb[18].mxu1 }
 0x67b   : > { %v1939_v54 = vmul.f32 %v2438_v52, %v1788_v53  ;;  %v2301_v55 = vpop.f32.mrb[19].mxu1 }
 0x67d   : > { %1944 = vst.msk [vmem:[%s402_s17 + $0x1] sm:$0x1] %vm1942_vm4, %v1939_v54 }
 0x67e   : > { %v1861_v57 = vpop.f32.mrb[16].mxu0 }
 0x67f   : > { %v1940_v59 = vmul.f32 %v2440_v56, %v1861_v57  ;;  %v1934_v60 = vpop.f32.mrb[20].mxu1  ;;  %v2306_v61 = vpop.f32.mrb[17].mxu0 }
 0x680   : > { %v1941_v62 = vmul.f32 %v2442_v58, %v1934_v60  ;;  %v2311_v63 = vpop.f32.mrb[21].mxu1 }
 0x681   : > { %1945 = vst.msk [vmem:[%s402_s17 + $0x2] sm:$0x1] %vm1942_vm4, %v1940_v59 }
 0x682   : > { %1946 = vst.msk [vmem:[%s402_s17 + $0x3] sm:$0x1] %vm1942_vm4, %v1941_v62 }
 0x683   : > { %2602 = shalt.err (!%p2599_p1)
}
 0x684   : > { %s2603_s23 = scalar_lea.hbm %s3133_s9, 64  ;;  %s2607_s15 = scalar_lea.hbm %s3186_s7, 128 }
 0x685   : > { %p2604_p5 = scmp.ne.s32.totalorder %s3133_s9, %s2603_s23  ;;  %p2608_p4 = scmp.lt.u32.totalorder %s3133_s9, %s3186_s7 }
 0x686   : > { %p2609_p8 = scmp.lt.u32.totalorder %s2607_s15, %s2603_s23  ;;  %p2611_p3 = scmp.lt.u32.totalorder %s2603_s23, %s3133_s9 }
 0x687   : > { %p2605_p11 = pnand %p2604_p5, %p3239_p7 }
 0x688   : > { %p2610_p13 = por %p2609_p8, %p2608_p4 }
 0x689   : > { %p2606_p12 = pneg %p2605_p11 }
 0x68a   : > { %p2612_p0 = por %p2611_p3, %p2610_p13 }
 0x68c   : > { %p2613_p6 = pnand %p2612_p0, %p2606_p12 }
 0x68e   : > { %2616 = shalt.err (!%p2613_p6)
}
 0x68f   : > { %s2675_s29 = smov 16   ;;  %s2676_s24 = smov 1  }
 0x690   : > { %2342 = dma.vmem_to_hbm [thread:$0]  (%p3239_p7), %s3128_s10, 64, %s3133_s9, %s1948_s28, %s2675_s29, %s2675_s29, %s2676_s24  }
 0x691 PF: > { %s3240_s14 = sld [smem:[#allocation16_spill]]  ;;  %s3241_s18 = sld [smem:[#allocation20_spill]] }
 0x692   : > { %s3242_s17 = sld [smem:[#allocation17_spill]] }
 0x697   : > { %s1976_s16 = sand.u32 1, %s3240_s14   ;;  %p3243_p2 = scmp.ne.s32.totalorder %s3241_s18, 0 }
 0x698   : > { %p3244_p9 = scmp.ge.s32.totalorder %s3242_s17, 2  ;;  %s1977_s19 = scalar_lea.sflag [#allocation4], %s1976_s16 }
 0x69a   : > { %p2362_p10 = pnand %p3244_p9, %p3243_p2 }
 0x69c   : > { %2646 = dma.done.wait (!%p2362_p10), %s1977_s19, 64  }
 0x69d   : > { %2648 = vsyncadd (!%p2362_p10), %s1977_s19, 4294967232  ;;  %s3245_s27 = sld [smem:[#allocation18_spill]]  ;;  %s3246_s20 = sld [smem:[#allocation19_spill]] }
 0x69e   : > { %s3247_s24 = smov %s2655_s25  ;;  %s3248_s25 = smov %s2659_s26 }
 0x6a3   : > { %p24_p1 = scmp.ge.s32.totalorder %s3245_s27, 4   ;;  %s3249_s26 = smov %s3246_s20 }
 0x6a5   :  { %26 = sbr.rel (!%p24_p1) target bundleno = 11 (0xb), region = 125 }
 0x6ac   :  { %1982 = vsyncpa [#allocation3], 1 }
 0x6ad   :  { %1984 = vsyncpa [#allocation3 + $0x1], 1 }
 0x6ae   :  { %1985 = vsyncpa [#allocation6], 1 }
 0x6af   :  { %1987 = vsyncpa [#allocation6 + $0x1], 1 }
 0x6b0   :  { %1988 = vsyncpa [#allocation9], 1 }
 0x6b1   :  { %1989 = vsyncpa [#allocation4], 1 }
 0x6b2   :  { %1991 = vsyncpa [#allocation4 + $0x1], 1 }

</bundles_post_ra>
